<compile_context>
chip_gen: v7x
topology: tpu7x:2x2x1
jax: 0.10.0
libtpu: 0.0.40
codegen_flags: <defaults>
</compile_context>

<pallas_src>
import functools
import math

import jax
import jax.numpy as jnp
from jax.experimental import pallas as pl
from jax.experimental.pallas import tpu as pltpu


NEG_INF = -1e30          # finite causal-mask value (avoids inf-inf NaNs)


def _vmem_limit_bytes():
    # ~half of physical VMEM: 64 MiB on v5e/v6e (128 MiB phys), 32 MiB on v7x (64 MiB).
    try:
        cap = int(pltpu.get_tpu_info().vmem_capacity_bytes)
    except Exception:
        cap = 64 * 1024 * 1024
    return int(min(96 * 1024 * 1024, max(32 * 1024 * 1024, cap // 2)))


VMEM_LIMIT = _vmem_limit_bytes()


def _fit(dim, pref):
    """Largest tile <= pref that divides dim (collapses to full dim at toy shapes)."""
    if dim <= pref:
        return dim
    return math.gcd(dim, pref)


# --------------------- per-row inv-rms (K-tiled reduction) --------------------

def _rms_stats_kernel(x_ref, o_ref, acc_ref, *, eps, dim):
    k = pl.program_id(1)

    @pl.when(k == 0)
    def _():
        acc_ref[...] = jnp.zeros_like(acc_ref)

    x = x_ref[...].astype(jnp.float32)
    acc_ref[...] += jnp.sum(x * x, axis=-1, keepdims=True)

    @pl.when(k == pl.num_programs(1) - 1)
    def _():
        o_ref[...] = jax.lax.rsqrt(acc_ref[...] / dim + eps)


def rms_stats(x2d, *, eps=1e-5, tm=512, tk=1024):
    M, C = x2d.shape
    tm, tk = _fit(M, tm), _fit(C, tk)
    return pl.pallas_call(
        functools.partial(_rms_stats_kernel, eps=eps, dim=float(C)),
        out_shape=jax.ShapeDtypeStruct((M, 1), jnp.float32),
        grid=(M // tm, C // tk),
        in_specs=[pl.BlockSpec((tm, tk), lambda i, k: (i, k))],
        out_specs=pl.BlockSpec((tm, 1), lambda i, k: (i, 0)),
        scratch_shapes=[pltpu.VMEM((tm, 1), jnp.float32)],
        compiler_params=pltpu.CompilerParams(
            dimension_semantics=("parallel", "arbitrary"),
            vmem_limit_bytes=VMEM_LIMIT),
    )(x2d)


# --------------- K-tiled "scaled" matmul (rmsnorm folded into A tile) ---------

def _scaled_matmul_kernel(a_ref, s_ref, g_ref, w_ref, o_ref, acc_ref):
    k = pl.program_id(2)

    @pl.when(k == 0)
    def _():
        acc_ref[...] = jnp.zeros_like(acc_ref)

    a = a_ref[...].astype(jnp.float32)
    an = (a * s_ref[...] * g_ref[...]).astype(w_ref.dtype)   # x * inv_rms * gamma
    acc_ref[...] += jnp.dot(an, w_ref[...], preferred_element_type=jnp.float32)

    @pl.when(k == pl.num_programs(2) - 1)
    def _():
        o_ref[...] = acc_ref[...].astype(o_ref.dtype)


def rms_matmul(x2d, inv_rms, gamma, w, *, out_dtype=jnp.bfloat16,
               tm=512, tn=512, tk=1024):
    M, C = x2d.shape
    _, N = w.shape
    tm, tn, tk = _fit(M, tm), _fit(N, tn), _fit(C, tk)
    return pl.pallas_call(
        _scaled_matmul_kernel,
        out_shape=jax.ShapeDtypeStruct((M, N), out_dtype),
        grid=(M // tm, N // tn, C // tk),
        in_specs=[
            pl.BlockSpec((tm, tk), lambda i, j, k: (i, k)),
            pl.BlockSpec((tm, 1), lambda i, j, k: (i, 0)),
            pl.BlockSpec((1, tk), lambda i, j, k: (0, k)),
            pl.BlockSpec((tk, tn), lambda i, j, k: (k, j)),
        ],
        out_specs=pl.BlockSpec((tm, tn), lambda i, j, k: (i, j)),
        scratch_shapes=[pltpu.VMEM((tm, tn), jnp.float32)],
        compiler_params=pltpu.CompilerParams(
            dimension_semantics=("parallel", "parallel", "arbitrary"),
            vmem_limit_bytes=VMEM_LIMIT),
    )(x2d, inv_rms, gamma, w)


# ----------- K-tiled rmsnorm + SwiGLU (fc1, fc2, silu*mul epilogue) ----------

def _scaled_swiglu_kernel(a_ref, s_ref, g_ref, w1_ref, w2_ref, o_ref, acc1, acc2):
    k = pl.program_id(2)

    @pl.when(k == 0)
    def _():
        acc1[...] = jnp.zeros_like(acc1)
        acc2[...] = jnp.zeros_like(acc2)

    a = a_ref[...].astype(jnp.float32)
    an = (a * s_ref[...] * g_ref[...]).astype(w1_ref.dtype)
    acc1[...] += jnp.dot(an, w1_ref[...], preferred_element_type=jnp.float32)
    acc2[...] += jnp.dot(an, w2_ref[...], preferred_element_type=jnp.float32)

    @pl.when(k == pl.num_programs(2) - 1)
    def _():
        h1, h2 = acc1[...], acc2[...]
        o_ref[...] = (h1 * jax.nn.sigmoid(h1) * h2).astype(o_ref.dtype)   # silu(h1)*h2


def rms_swiglu(x2d, inv_rms, gamma, w1, w2, *, out_dtype=jnp.bfloat16,
               tm=512, tn=512, tk=1024):
    M, C = x2d.shape
    H = w1.shape[1]
    tm, tn, tk = _fit(M, tm), _fit(H, tn), _fit(C, tk)
    return pl.pallas_call(
        _scaled_swiglu_kernel,
        out_shape=jax.ShapeDtypeStruct((M, H), out_dtype),
        grid=(M // tm, H // tn, C // tk),
        in_specs=[
            pl.BlockSpec((tm, tk), lambda i, j, k: (i, k)),
            pl.BlockSpec((tm, 1), lambda i, j, k: (i, 0)),
            pl.BlockSpec((1, tk), lambda i, j, k: (0, k)),
            pl.BlockSpec((tk, tn), lambda i, j, k: (k, j)),
            pl.BlockSpec((tk, tn), lambda i, j, k: (k, j)),
        ],
        out_specs=pl.BlockSpec((tm, tn), lambda i, j, k: (i, j)),
        scratch_shapes=[pltpu.VMEM((tm, tn), jnp.float32),
                        pltpu.VMEM((tm, tn), jnp.float32)],
        compiler_params=pltpu.CompilerParams(
            dimension_semantics=("parallel", "parallel", "arbitrary"),
            vmem_limit_bytes=VMEM_LIMIT),
    )(x2d, inv_rms, gamma, w1, w2)


# ------------- tiled matmul + residual epilogue (f32 accumulator) -------------

def _matmul_residual_kernel(a_ref, b_ref, res_ref, o_ref, acc_ref):
    @pl.when(pl.program_id(2) == 0)
    def _():
        acc_ref[...] = jnp.zeros_like(acc_ref)

    acc_ref[...] += jnp.dot(a_ref[...], b_ref[...], preferred_element_type=jnp.float32)

    @pl.when(pl.program_id(2) == pl.num_programs(2) - 1)
    def _():
        o_ref[...] = (res_ref[...].astype(jnp.float32) + acc_ref[...]).astype(o_ref.dtype)


def matmul_residual(a, b, res, *, out_dtype=jnp.bfloat16, tm=512, tn=512, tk=1024):
    M, K = a.shape
    _, N = b.shape
    tm, tn, tk = _fit(M, tm), _fit(N, tn), _fit(K, tk)
    return pl.pallas_call(
        _matmul_residual_kernel,
        out_shape=jax.ShapeDtypeStruct((M, N), out_dtype),
        grid=(M // tm, N // tn, K // tk),
        in_specs=[
            pl.BlockSpec((tm, tk), lambda i, j, k: (i, k)),
            pl.BlockSpec((tk, tn), lambda i, j, k: (k, j)),
            pl.BlockSpec((tm, tn), lambda i, j, k: (i, j)),
        ],
        out_specs=pl.BlockSpec((tm, tn), lambda i, j, k: (i, j)),
        scratch_shapes=[pltpu.VMEM((tm, tn), jnp.float32)],
        compiler_params=pltpu.CompilerParams(
            dimension_semantics=("parallel", "parallel", "arbitrary"),
            vmem_limit_bytes=VMEM_LIMIT),
    )(a, b, res)


# -------- flash causal attention: fused RoPE, reads QKV / writes Y directly ---

def _rope_half(x, cos, sin):
    """Rotate-half RoPE on a (t, hs) f32 tile.

    cos/sin are (t, hs) with each frequency duplicated across both halves.
    (The q/k weight columns were permuted interleaved->half, so this equals the
    interleaved-pair rotation of the reference; q.k^T is invariant to the common
    permutation of the head dim.)
    """
    hs = x.shape[-1]
    half = hs // 2
    rot = pltpu.roll(x, shift=half, axis=1)                   # [x2 | x1]
    col = jax.lax.broadcasted_iota(jnp.int32, x.shape, 1)
    rot = jnp.where(col < half, -rot, rot)                    # [-x2 | x1]
    return x * cos + rot * sin


def _flash_attn_kernel(q_ref, k_ref, v_ref, cq_ref, sq_ref, ck_ref, sk_ref,
                       o_ref, qrot_sc, m_sc, l_sc, acc_sc, *, scale, tq, tkv):
    qi = pl.program_id(2)
    ki = pl.program_id(3)

    @pl.when(ki == 0)
    def _():
        m_sc[...] = jnp.full_like(m_sc, NEG_INF)
        l_sc[...] = jnp.zeros_like(l_sc)
        acc_sc[...] = jnp.zeros_like(acc_sc)
        # RoPE(q) * 1/sqrt(hs), computed once per q block and cached in VMEM.
        q = q_ref[...].astype(jnp.float32)
        qr = _rope_half(q, cq_ref[...], sq_ref[...]) * scale
        qrot_sc[...] = qr.astype(qrot_sc.dtype)

    q_start = qi * tq
    k_start = ki * tkv
    visible = k_start <= q_start + (tq - 1)       # block intersects lower triangle
    needs_mask = k_start + (tkv - 1) > q_start    # block straddles the diagonal

    def update(apply_mask):
        k = k_ref[...].astype(jnp.float32)
        kr = _rope_half(k, ck_ref[...], sk_ref[...]).astype(jnp.bfloat16)
        s = jax.lax.dot_general(qrot_sc[...], kr, (((1,), (1,)), ((), ())),
                                preferred_element_type=jnp.float32)   # (tq, tkv)
        if apply_mask:
            row = q_start + jax.lax.broadcasted_iota(jnp.int32, (tq, tkv), 0)
            col = k_start + jax.lax.broadcasted_iota(jnp.int32, (tq, tkv), 1)
            s = jnp.where(col <= row, s, NEG_INF)
        m_prev = m_sc[...]
        m_new = jnp.maximum(m_prev, jnp.max(s, axis=-1, keepdims=True))
        alpha = jnp.exp(m_prev - m_new)
        p = jnp.exp(s - m_new)
        l_sc[...] = alpha * l_sc[...] + jnp.sum(p, axis=-1, keepdims=True)
        acc_sc[...] = alpha * acc_sc[...] + jnp.dot(
            p.astype(v_ref.dtype), v_ref[...], preferred_element_type=jnp.float32)
        m_sc[...] = m_new

    @pl.when(jnp.logical_and(visible, needs_mask))
    def _():
        update(True)

    @pl.when(jnp.logical_and(visible, jnp.logical_not(needs_mask)))
    def _():
        update(False)

    @pl.when(ki == pl.num_programs(3) - 1)
    def _():
        inv_l = pl.reciprocal(l_sc[...], approx=True)      # EUP slot, VPU stays free
        o_ref[...] = (acc_sc[...] * inv_l).astype(o_ref.dtype)


def flash_attention(qkv2d, cos_half, sin_half, *, n_batch, seq_len, n_head,
                    tq=256, tkv=512):
    """qkv2d: (B*T, 3*C) bf16 with q/k columns in rotate-half layout.
    Returns y in (B*T, C) layout (head-major columns), ready for the out proj."""
    M, C3 = qkv2d.shape
    C = C3 // 3
    hs = C // n_head
    B, T = n_batch, seq_len
    assert M == B * T
    assert hs % 128 == 0, "head_dim must be a multiple of 128 (true for all LLaMA configs)"
    # TODO(synk): pack multiple heads per block if head_dim < 128 support is needed.

    scale = 1.0 / math.sqrt(hs)
    tq, tkv = _fit(T, tq), _fit(T, tkv)
    nq, nkv = T // tq, T // tkv
    nh = n_head

    def last_visible(qi):                         # last KV block touching the triangle
        return ((qi + 1) * tq - 1) // tkv

    q_map = lambda b, h, qi, ki: (b * nq + qi, h)
    # Clamp K/V (and their rope rows) to the causal extent: masked-out steps revisit
    # the previous block, so Pallas skips the DMA; pl.when skips the compute.
    k_map = lambda b, h, qi, ki: (b * nkv + jnp.minimum(ki, last_visible(qi)), nh + h)
    v_map = lambda b, h, qi, ki: (b * nkv + jnp.minimum(ki, last_visible(qi)), 2 * nh + h)
    cq_map = lambda b, h, qi, ki: (qi, 0)
    ck_map = lambda b, h, qi, ki: (jnp.minimum(ki, last_visible(qi)), 0)
    o_map = lambda b, h, qi, ki: (b * nq + qi, h)

    kernel = functools.partial(_flash_attn_kernel, scale=scale, tq=tq, tkv=tkv)
    # TODO(synk): collapse (qi, ki) into a triangular grid axis via
    # PrefetchScalarGridSpec lookup tables to drop the dead grid steps entirely.
    return pl.pallas_call(
        kernel,
        out_shape=jax.ShapeDtypeStruct((M, C), qkv2d.dtype),
        grid=(B, nh, nq, nkv),
        in_specs=[
            pl.BlockSpec((tq, hs), q_map),
            pl.BlockSpec((tkv, hs), k_map),
            pl.BlockSpec((tkv, hs), v_map),
            pl.BlockSpec((tq, hs), cq_map),
            pl.BlockSpec((tq, hs), cq_map),
            pl.BlockSpec((tkv, hs), ck_map),
            pl.BlockSpec((tkv, hs), ck_map),
        ],
        out_specs=pl.BlockSpec((tq, hs), o_map),
        scratch_shapes=[
            pltpu.VMEM((tq, hs), jnp.bfloat16),   # cached rope(q)*scale
            pltpu.VMEM((tq, 1), jnp.float32),     # running max m
            pltpu.VMEM((tq, 1), jnp.float32),     # running denom l
            pltpu.VMEM((tq, hs), jnp.float32),    # f32 output accumulator
        ],
        compiler_params=pltpu.CompilerParams(
            dimension_semantics=("parallel", "parallel", "parallel", "arbitrary"),
            vmem_limit_bytes=VMEM_LIMIT),
    )(qkv2d, qkv2d, qkv2d, cos_half, sin_half, cos_half, sin_half)


# ------------------------------ JAX glue -----------------------------------

def build_rope_cache(seq_len, n_elem, base=10000):
    theta = 1.0 / (base ** (jnp.arange(0, n_elem, 2, dtype=jnp.float32) / n_elem))
    seq_idx = jnp.arange(seq_len, dtype=jnp.float32)
    idx_theta = jnp.outer(seq_idx, theta)              # (seq_len, n_elem//2)
    return jnp.cos(idx_theta), jnp.sin(idx_theta)


def _permute_qk_columns(w_attn, n_head, hs):
    """Permute q/k weight columns (per head) from interleaved-pair order to
    rotate-half order [0,2,4,...,1,3,5,...]; v columns untouched."""
    C = n_head * hs
    per_head = list(range(0, hs, 2)) + list(range(1, hs, 2))
    p = jnp.array([h * hs + d for h in range(n_head) for d in per_head], jnp.int32)
    cols = jnp.concatenate([p, C + p, 2 * C + jnp.arange(C, dtype=jnp.int32)])
    return w_attn[:, cols]


def init_params(key, n_embd, n_hidden):
    ks = jax.random.split(key, 5)

    def lin(k, fan_in, fan_out):
        bound = 1.0 / (fan_in ** 0.5)
        return jax.random.uniform(k, (fan_in, fan_out), jnp.float32, -bound, bound)

    return {
        "rms1_scale": jnp.ones((n_embd,), jnp.float32),
        "rms2_scale": jnp.ones((n_embd,), jnp.float32),
        "w_attn": lin(ks[0], n_embd, 3 * n_embd),
        "w_attn_proj": lin(ks[1], n_embd, n_embd),
        "w_fc1": lin(ks[2], n_embd, n_hidden),
        "w_fc2": lin(ks[3], n_embd, n_hidden),
        "w_mlp_proj": lin(ks[4], n_hidden, n_embd),
    }


def block_forward(params, x, n_head, cos, sin):
    """x: (B, T, C) f32.  cos/sin: (seq, hs//2) f32 interleaved-pair rope cache."""
    B, T, C = x.shape
    hs = C // n_head
    bf16 = jnp.bfloat16

    # --- one-time weight/cache prep (would be folded into the checkpoint offline) ---
    # TODO(synk): fold the rope column permutation + bf16 casts into stored weights.
    w_attn = _permute_qk_columns(params["w_attn"], n_head, hs).astype(bf16)
    w_attn_proj = params["w_attn_proj"].astype(bf16)
    w_fc1 = params["w_fc1"].astype(bf16)
    w_fc2 = params["w_fc2"].astype(bf16)
    w_mlp_proj = params["w_mlp_proj"].astype(bf16)
    g1 = params["rms1_scale"].reshape(1, C).astype(jnp.float32)
    g2 = params["rms2_scale"].reshape(1, C).astype(jnp.float32)
    # rotate-half form of the rope cache: duplicate each frequency across both halves
    cos_half = jnp.concatenate([cos[:T], cos[:T]], axis=-1)   # (T, hs)
    sin_half = jnp.concatenate([sin[:T], sin[:T]], axis=-1)

    x2d = x.reshape(B * T, C).astype(bf16)                    # bf16 residual stream

    # ---- attention: x = x + attn_proj(flash(rope(qkv(rms_1(x))))) ----
    inv1 = rms_stats(x2d)                                      # (M,1) f32 inv-rms
    qkv = rms_matmul(x2d, inv1, g1, w_attn)                    # (M, 3C) bf16
    y = flash_attention(qkv, cos_half, sin_half,
                        n_batch=B, seq_len=T, n_head=n_head)   # (M, C) bf16
    x2d = matmul_residual(y, w_attn_proj, x2d)                 # x + y @ W_proj (bf16)

    # ---- MLP: x = x + mlp_proj(swiglu(rms_2(x))) ----
    inv2 = rms_stats(x2d)
    h = rms_swiglu(x2d, inv2, g2, w_fc1, w_fc2)                # (M, H) bf16
    x2d = matmul_residual(h, w_mlp_proj, x2d)

    return x2d.astype(jnp.float32).reshape(B, T, C)


# --------------------------- pure-JAX reference -----------------------------

def apply_rope_ref(x, cos, sin):
    # x: (B, nh, T, hs); interleaved-pair RoPE, matching the PyTorch reference.
    B, nh, T, hs = x.shape
    xs = x.astype(jnp.float32).reshape(B, nh, T, hs // 2, 2)
    c = cos[:T].reshape(1, 1, T, hs // 2)
    s = sin[:T].reshape(1, 1, T, hs // 2)
    x0, x1 = xs[..., 0], xs[..., 1]
    out = jnp.stack([x0 * c - x1 * s, x1 * c + x0 * s], axis=-1)
    return out.reshape(B, nh, T, hs)


def block_ref(params, x, n_head, cos, sin, eps=1e-5, compute_dtype=jnp.float32):
    """Reference; compute_dtype=bf16 mirrors the kernel's bf16 operands/residual."""
    cd = compute_dtype
    B, T, C = x.shape
    hs = C // n_head
    scale = 1.0 / math.sqrt(hs)

    def rms(v):
        v32 = v.astype(jnp.float32)
        ms = jnp.mean(v32 * v32, axis=-1, keepdims=True)
        return v32 * jax.lax.rsqrt(ms + eps)

    def mm(a, b):
        return jnp.dot(a.astype(cd), b.astype(cd), preferred_element_type=jnp.float32)

    xs = x.reshape(B * T, C).astype(cd)                  # residual stream in cd
    hn = rms(xs) * params["rms1_scale"]
    qkv = mm(hn, params["w_attn"]).astype(cd).reshape(B, T, 3, n_head, hs)
    q = jnp.transpose(qkv[:, :, 0], (0, 2, 1, 3))
    k = jnp.transpose(qkv[:, :, 1], (0, 2, 1, 3))
    v = jnp.transpose(qkv[:, :, 2], (0, 2, 1, 3))
    q = (apply_rope_ref(q, cos, sin) * scale).astype(cd)
    k = apply_rope_ref(k, cos, sin).astype(cd)

    s = jnp.einsum("bhqd,bhkd->bhqk", q, k, preferred_element_type=jnp.float32)
    mask = jnp.tril(jnp.ones((T, T), bool))
    s = jnp.where(mask, s, NEG_INF)
    m = jnp.max(s, axis=-1, keepdims=True)
    p = jnp.exp(s - m)
    l = jnp.sum(p, axis=-1, keepdims=True)
    y = jnp.einsum("bhqk,bhkd->bhqd", p.astype(cd), v,
                   preferred_element_type=jnp.float32) / l
    y = y.astype(cd)
    y = jnp.transpose(y, (0, 2, 1, 3)).reshape(B * T, C)
    xs = (xs.astype(jnp.float32) + mm(y, params["w_attn_proj"])).astype(cd)

    hn = rms(xs) * params["rms2_scale"]
    h1 = mm(hn, params["w_fc1"])
    h2 = mm(hn, params["w_fc2"])
    hid = (h1 * jax.nn.sigmoid(h1) * h2).astype(cd)
    xs = (xs.astype(jnp.float32) + mm(hid, params["w_mlp_proj"])).astype(cd)
    return xs.astype(jnp.float32).reshape(B, T, C)


# --------------------------------- main --------------------------------------

if __name__ == "__main__":
    # small config with LLaMA-style head_dim=128: n_embd=256, n_head=2, T=16, B=2
    B, T, n_embd, n_head, block_size = 2, 16, 256, 2, 32
    hidden_dim = 4 * n_embd
    n_hidden = int(2 * hidden_dim / 3)
    N = 256
    n_hidden = (n_hidden - 1) // N * N + N              # -> 768 (same rule as module)

    key = jax.random.PRNGKey(0)
    kx, kp = jax.random.split(key)
    x = jax.random.normal(kx, (B, T, n_embd), jnp.float32)
    params = init_params(kp, n_embd, n_hidden)
    cos, sin = build_rope_cache(block_size, n_embd // n_head)

    out = block_forward(params, x, n_head, cos, sin)
    out = jax.block_until_ready(out)
    assert out.shape == (B, T, n_embd)
    assert bool(jnp.isfinite(out).all())

    # tight check vs matched-precision (bf16 operands + bf16 residual stream) reference
    ref_bf16 = block_ref(params, x, n_head, cos, sin, compute_dtype=jnp.bfloat16)
    assert jnp.allclose(out, ref_bf16, atol=2e-2, rtol=2e-2), float(
        jnp.max(jnp.abs(out - ref_bf16)))

    # loose sanity check vs the full-f32 semantic reference (PyTorch-equivalent)
    ref_f32 = block_ref(params, x, n_head, cos, sin, compute_dtype=jnp.float32)
    assert jnp.allclose(out, ref_f32, atol=2e-1, rtol=2e-1)

    print("KERNEL_OK")
</pallas_src>

<mosaic_0001>
module attributes {stable_mosaic.version = 11 : i64} {
  func.func @_rms_stats_kernel(%arg0: i32, %arg1: i32, %arg2: memref<32x256xbf16, #tpu.memory_space<vmem>>, %arg3: memref<32x1xf32, #tpu.memory_space<vmem>>, %arg4: memref<32x1xf32, #tpu.memory_space<vmem>>) attributes {dimension_semantics = [#tpu.dimension_semantics<parallel>, #tpu.dimension_semantics<arbitrary>], iteration_bounds = array<i64: 1, 1>, scalar_prefetch = 0 : i64, scratch_operands = 1 : i64, tpu.core_type = #tpu.core_type<tc>, window_params = [{transform_indices = @transform_0, window_bounds = array<i64: 32, 256>}, {transform_indices = @transform_1, window_bounds = array<i64: 32, 1>}]} {
    %c0_i32 = arith.constant 0 : i32
    %0 = arith.cmpi eq, %arg1, %c0_i32 : i32
    %1 = arith.extui %0 : i1 to i32
    %c0_i32_0 = arith.constant 0 : i32
    %2 = arith.cmpi ne, %1, %c0_i32_0 : i32
    scf.if %2 {
      %cst_8 = arith.constant 0.000000e+00 : f32
      %14 = vector.broadcast %cst_8 : f32 to vector<32x1xf32>
      %c0_9 = arith.constant 0 : index
      %c0_10 = arith.constant 0 : index
      %15 = vector.load %arg4[%c0_9, %c0_10] : memref<32x1xf32, #tpu.memory_space<vmem>>, vector<32x1xf32>
      tpu.vector_store %arg4[%c0_9, %c0_10], %14 {strides = array<i32>} : memref<32x1xf32, #tpu.memory_space<vmem>>, vector<32x1xf32>,
    } else {
    }
    %c0 = arith.constant 0 : index
    %c0_1 = arith.constant 0 : index
    %3 = vector.load %arg2[%c0, %c0_1] : memref<32x256xbf16, #tpu.memory_space<vmem>>, vector<32x256xbf16>
    %4 = arith.extf %3 : vector<32x256xbf16> to vector<32x256xf32>
    %c0_2 = arith.constant 0 : index
    %c0_3 = arith.constant 0 : index
    %5 = vector.load %arg4[%c0_2, %c0_3] : memref<32x1xf32, #tpu.memory_space<vmem>>, vector<32x1xf32>
    %6 = arith.mulf %4, %4 : vector<32x256xf32>
    %cst = arith.constant dense<0.000000e+00> : vector<32xf32>
    %7 = vector.multi_reduction <add>, %6, %cst [1] : vector<32x256xf32> to vector<32xf32>
    %8 = vector.shape_cast %7 : vector<32xf32> to vector<32x1xf32>
    %9 = arith.addf %5, %8 : vector<32x1xf32>
    %c0_4 = arith.constant 0 : index
    %c0_5 = arith.constant 0 : index
    %10 = vector.load %arg4[%c0_4, %c0_5] : memref<32x1xf32, #tpu.memory_space<vmem>>, vector<32x1xf32>
    tpu.vector_store %arg4[%c0_4, %c0_5], %9 {strides = array<i32>} : memref<32x1xf32, #tpu.memory_space<vmem>>, vector<32x1xf32>,
    %c0_i32_6 = arith.constant 0 : i32
    %11 = arith.cmpi eq, %arg1, %c0_i32_6 : i32
    %12 = arith.extui %11 : i1 to i32
    %c0_i32_7 = arith.constant 0 : i32
    %13 = arith.cmpi ne, %12, %c0_i32_7 : i32
    scf.if %13 {
      %c0_8 = arith.constant 0 : index
      %c0_9 = arith.constant 0 : index
      %14 = vector.load %arg4[%c0_8, %c0_9] : memref<32x1xf32, #tpu.memory_space<vmem>>, vector<32x1xf32>
      %cst_10 = arith.constant 2.560000e+02 : f32
      %15 = vector.broadcast %cst_10 : f32 to vector<32x1xf32>
      %16 = arith.divf %14, %15 : vector<32x1xf32>
      %cst_11 = arith.constant 9.99999974E-6 : f32
      %17 = vector.broadcast %cst_11 : f32 to vector<32x1xf32>
      %18 = arith.addf %16, %17 : vector<32x1xf32>
      %19 = math.rsqrt %18 : vector<32x1xf32>
      %c0_12 = arith.constant 0 : index
      %c0_13 = arith.constant 0 : index
      %20 = vector.load %arg3[%c0_12, %c0_13] : memref<32x1xf32, #tpu.memory_space<vmem>>, vector<32x1xf32>
      tpu.vector_store %arg3[%c0_12, %c0_13], %19 {strides = array<i32>} : memref<32x1xf32, #tpu.memory_space<vmem>>, vector<32x1xf32>,
    } else {
    }
    return
  }
  func.func @transform_0(%arg0: i32, %arg1: i32) -> (i32, i32) {
    %c0_i32 = arith.constant 0 : i32
    return %arg0, %arg1 : i32, i32
  }
  func.func @transform_1(%arg0: i32, %arg1: i32) -> (i32, i32) {
    %c0_i32 = arith.constant 0 : i32
    %c0_i32_0 = arith.constant 0 : i32
    return %arg0, %c0_i32 : i32, i32
  }
}

</mosaic_0001>

<bundles_post_ra>
// kernel: tpu_custom_call.1
= control target key start
LH: loop header
LB: loop body
LE: loop exit
PB: predicated region body
PF: predicated region fallthrough
CT: control target
= control target key end

     0   :  { %6 = vsyncpa [#allocation4], 0  ;;  %s141_s6 = smov [#allocation3]   ;;  %s191_s0 = inlined_call_operand.hbm [shape: bf16[32,256], index: 0, kind: input, shape index: {}]   ;;  %s192_s1 = inlined_call_operand.vmem [shape: f32[32,1], index: 1, kind: output, shape index: {}]  }
   0x1   :  { %s12_s7 = sshll.u32 %s141_s6, 4  ;;  %s117_s10 = scalar_lea.hbm %s191_s0, 512  ;;  %s13_s7 = int_to_ptr.vmem [resolvable:$true] %s12_s7 }
   0x2   :  { %p118_p0 = scmp.ne.s32.totalorder %s191_s0, %s117_s10  ;;  %p121_p1 = scmp.lt.u32.totalorder %s117_s10, %s191_s0 }
   0x4   :  { %p123_p2 = pnand %p121_p1, %p118_p0 }
   0x6   :  { %126 = shalt.err (!%p123_p2)
}
   0x7   :  { %s127_s15 = scalar_lea.vmem %s13_s7, 512  ;;  %p132_p4 = scmp.lt.s32.totalorder %s13_s7, %s13_s7 }
   0x8   :  { %p128_p3 = scmp.ne.s32.totalorder %s13_s7, %s127_s15  ;;  %p133_p5 = scmp.lt.s32.totalorder %s127_s15, %s127_s15 }
   0xa   :  { %p134_p6 = por %p133_p5, %p132_p4 }
   0xc   :  { %p135_p7 = pnand %p134_p6, %p128_p3 }
   0xe   :  { %138 = shalt.err (!%p135_p7)
}
   0xf   :  { %s142_s16 = smov 128   ;;  %s143_s17 = smov 8  }
  0x10   :  { %18 = dma.hbm_to_vmem [thread:$0]  %s191_s0, 512, %s13_s7, [#allocation4], %s142_s16, %s142_s16, %s143_s17  }
  0x11   :  { %139 = dma.done.wait [#allocation4], 512  }
  0x12   :  { %140 = vsyncadd [#allocation4], 4294966784  ;;  %vm26_vm0 = vcmask 7168   ;;  %v144_v0 = vmov 0.0   ;;  %v33_v1 = vld [vmem:[#allocation3 + $0x10] sm:$0xff]  ;;  %v31_v2 = vld [vmem:[#allocation3] sm:$0xff] }
  0x13   :  { %29 = vst.msk [vmem:[#allocation2 + $0x10] sm:$0xff] %vm26_vm0, %v144_v0  ;;  %27 = vst.msk [vmem:[#allocation2] sm:$0xff] %vm26_vm0, %v144_v0  ;;  %v34_v3 = vld [vmem:[#allocation3 + $0x18] sm:$0xff]  ;;  %v39_v4 = vunpack.c.l.bf16 %v33_v1  ;;  %v40_v5 = vunpack.c.h.bf16 %v33_v1  ;;  %v35_v6 = vunpack.c.l.bf16 %v31_v2  ;;  %v36_v7 = vunpack.c.h.bf16 %v31_v2  ;;  %v32_v8 = vld [vmem:[#allocation3 + $0x8] sm:$0xff] }
  0x14   :  { %28 = vst.msk [vmem:[#allocation2 + $0x8] sm:$0xff] %vm26_vm0, %v144_v0  ;;  %30 = vst.msk [vmem:[#allocation2 + $0x18] sm:$0xff] %vm26_vm0, %v144_v0  ;;  %v41_v9 = vunpack.c.l.bf16 %v34_v3  ;;  %v42_v10 = vunpack.c.h.bf16 %v34_v3  ;;  %v37_v11 = vunpack.c.l.bf16 %v32_v8  ;;  %v38_v12 = vunpack.c.h.bf16 %v32_v8 }
  0x15   :  { %v51_v13 = vmul.f32 %v39_v4, %v39_v4  ;;  %v52_v14 = vmul.f32 %v40_v5, %v40_v5  ;;  %v47_v15 = vmul.f32 %v35_v6, %v35_v6  ;;  %v48_v16 = vmul.f32 %v36_v7, %v36_v7 }
  0x16   :  { %v53_v17 = vmul.f32 %v41_v9, %v41_v9  ;;  %v54_v18 = vmul.f32 %v42_v10, %v42_v10  ;;  %v49_v19 = vmul.f32 %v37_v11, %v37_v11  ;;  %v50_v20 = vmul.f32 %v38_v12, %v38_v12 }
  0x17   :  { %v61_v21 = vadd.f32 %v52_v14, %v51_v13  ;;  %v55_v22 = vadd.f32 %v48_v16, %v47_v15 }
  0x18   :  { %v64_v23 = vadd.f32 %v54_v18, %v53_v17  ;;  %v58_v24 = vadd.f32 %v50_v20, %v49_v19 }
  0x19   :  { %62 = vadd.xlane.f32.xlu1 %v61_v21  ;;  %56 = vadd.xlane.f32.xlu0 %v55_v22 }
  0x1a   :  { %v45_v25 = vld [vmem:[#allocation2 + $0x10] sm:$0xff]  ;;  %v43_v26 = vld [vmem:[#allocation2] sm:$0xff] }
  0x1b   :  { %v46_v31 = vld [vmem:[#allocation2 + $0x18] sm:$0xff]  ;;  %v44_v32 = vld [vmem:[#allocation2 + $0x8] sm:$0xff] }
  0x1d   :  { %65 = vadd.xlane.f32.xlu1 %v64_v23  ;;  %59 = vadd.xlane.f32.xlu0 %v58_v24 }
  0xa6   :  { %v63_v27 = vpop.xlane.xlu1 %62  ;;  %v57_v28 = vpop.xlane.xlu0 %56 }
  0xa7   :  { %v69_v29 = vadd.f32 %v63_v27, %v45_v25  ;;  %v67_v30 = vadd.f32 %v57_v28, %v43_v26 }
  0xa9   :  { %74 = vst.msk [vmem:[#allocation2 + $0x10] sm:$0xff] %vm26_vm0, %v69_v29  ;;  %72 = vst.msk [vmem:[#allocation2] sm:$0xff] %vm26_vm0, %v67_v30 }
  0xaa   :  { %v66_v33 = vpop.xlane.xlu1 %65  ;;  %v60_v34 = vpop.xlane.xlu0 %59 }
  0xab   :  { %v70_v35 = vadd.f32 %v66_v33, %v46_v31  ;;  %v68_v36 = vadd.f32 %v60_v34, %v44_v32 }
  0xad   :  { %75 = vst.msk [vmem:[#allocation2 + $0x18] sm:$0xff] %vm26_vm0, %v70_v35  ;;  %73 = vst.msk [vmem:[#allocation2 + $0x8] sm:$0xff] %vm26_vm0, %v68_v36 }
  0xb0   :  { %v81_v37 = vld [vmem:[#allocation2 + $0x10] sm:$0xff]  ;;  %v79_v38 = vld [vmem:[#allocation2] sm:$0xff] }
  0xb1   :  { %v86_v39 = vmul.f32 0.00390625, %v81_v37  ;;  %v84_v40 = vmul.f32 0.00390625, %v79_v38 }
  0xb3   :  { %v90_v41 = vadd.f32 1e-05, %v86_v39  ;;  %v88_v42 = vadd.f32 1e-05, %v84_v40 }
  0xb4   :  { %v82_v43 = vld [vmem:[#allocation2 + $0x18] sm:$0xff]  ;;  %v80_v44 = vld [vmem:[#allocation2 + $0x8] sm:$0xff] }
  0xb5   :  { %109 = vrsqrt.f32 %v90_v41  ;;  %v87_v45 = vmul.f32 0.00390625, %v82_v43  ;;  %v85_v46 = vmul.f32 0.00390625, %v80_v44 }
  0xb6   :  { %111 = vrsqrt.f32 %v88_v42 }
  0xb7   :  { %v91_v47 = vadd.f32 1e-05, %v87_v45  ;;  %v89_v48 = vadd.f32 1e-05, %v85_v46 }
  0xb9   :  { %113 = vrsqrt.f32 %v91_v47 }
  0xba   :  { %115 = vrsqrt.f32 %v89_v48 }
  0xbf   :  { %v110_v49 = vpop.eup %109 }
  0xc0   :  { %v112_v50 = vpop.eup %111  ;;  %98 = vst.msk [vmem:[%s192_s1 + $0x10] sm:$0xff] %vm26_vm0, %v110_v49 }
  0xc1   :  { %96 = vst.msk [vmem:[%s192_s1] sm:$0xff] %vm26_vm0, %v112_v50 }
  0xc3   :  { %v114_v51 = vpop.eup %113 }
  0xc4   :  { %v116_v52 = vpop.eup %115  ;;  %99 = vst.msk [vmem:[%s192_s1 + $0x18] sm:$0xff] %vm26_vm0, %v114_v51 }
  0xc5   :  { %97 = vst.msk [vmem:[%s192_s1 + $0x8] sm:$0xff] %vm26_vm0, %v116_v52 }
  0xc6   :  { %104 = vsyncpa [#allocation4], 1 }

</bundles_post_ra>
